<compile_context>
chip_gen: v5e
topology: v5e:2x2
jax: 0.10.0
libtpu: 0.0.40
codegen_flags: <defaults>
</compile_context>

<pallas_src>
import math

import jax
import jax.numpy as jnp
from jax.experimental import pallas as pl
from jax.experimental.pallas import tpu as pltpu


# ---------------------------------------------------------------------------
# Kernel 1: random per-node score (the RandomPool "score_layer")
# Lane-dense output: (cdiv(N,128), 128); the wrapper flattens/slices to (N,).
# ---------------------------------------------------------------------------
def _random_score_kernel(seed_ref, score_ref):
    """Equivalent of torch.rand(feature.size(0)): uniform [0, 1) per node."""
    rows, cols = score_ref.shape
    # flat node index per element (row-major), as uint32 counter
    row_ids = jax.lax.broadcasted_iota(jnp.int32, (rows, cols), 0).astype(jnp.uint32)
    col_ids = jax.lax.broadcasted_iota(jnp.int32, (rows, cols), 1).astype(jnp.uint32)
    idx = row_ids * jnp.uint32(cols) + col_ids

    seed = seed_ref[0].astype(jnp.uint32)
    x = idx ^ (seed * jnp.uint32(0x9E3779B9) + jnp.uint32(0x85EBCA6B))
    # splitmix32-style avalanche (pure VPU int ops: mul/xor/logical-shift)
    x = (x ^ (x >> 16)) * jnp.uint32(0x7FEB352D)
    x = (x ^ (x >> 15)) * jnp.uint32(0x846CA68B)
    x = x ^ (x >> 16)

    # top 24 random bits -> float in [0, 1)   (avoid bitcast for portability)
    u = (x >> 8).astype(jnp.int32).astype(jnp.float32) * jnp.float32(1.0 / (1 << 24))
    score_ref[...] = u


def random_scores(n_nodes: int, seed: int) -> jax.Array:
    lanes = 128
    rows = pl.cdiv(n_nodes, lanes)
    seed_arr = jnp.array([seed], dtype=jnp.int32)
    out = pl.pallas_call(
        _random_score_kernel,
        out_shape=jax.ShapeDtypeStruct((rows, lanes), jnp.float32),
        in_specs=[pl.BlockSpec(memory_space=pltpu.MemorySpace.SMEM)],
        out_specs=pl.BlockSpec(memory_space=pltpu.MemorySpace.VMEM),
    )(seed_arr)
    return out.reshape(-1)[:n_nodes]


# ---------------------------------------------------------------------------
# Kernel 2: feature_transform  ->  feature[perm] * tanh(score[perm])[:, None]
# Whole feature / score / output VMEM-resident; perm in SMEM; in-kernel gather.
# The loop only gathers rows; tanh + scale is one vectorized epilogue.
# ---------------------------------------------------------------------------
def _gather_scale_kernel(perm_ref, score_ref, feat_ref, out_ref, scale_ref):
    # perm_ref : SMEM (k,)  int32
    # score_ref: VMEM (N,1) f32
    # feat_ref : VMEM (N,D)
    # out_ref  : VMEM (k,D)
    # scale_ref: VMEM (k,1) f32 scratch (gathered raw scores)
    k = out_ref.shape[0]

    def body(i, carry):
        p = perm_ref[i]
        out_ref[pl.ds(i, 1), :] = feat_ref[pl.ds(p, 1), :]        # gathered row
        scale_ref[pl.ds(i, 1), :] = score_ref[pl.ds(p, 1), :]     # gathered score
        return carry

    jax.lax.fori_loop(0, k, body, 0, unroll=(k <= 32))

    # Single vectorized tanh (EUP slot) + scale over the whole (k, D) block.
    out_ref[...] = (out_ref[...].astype(jnp.float32)
                    * jnp.tanh(scale_ref[...])).astype(out_ref.dtype)


def feature_transform(feature: jax.Array, score2d: jax.Array, perm: jax.Array):
    n, d = feature.shape
    k = perm.shape[0]
    itemsize = jnp.dtype(feature.dtype).itemsize
    # feature + output + score + scale scratch, with slack; clamp to [16, 64] MiB
    needed = n * d * itemsize + k * d * itemsize + n * 4 + k * 4
    vmem_limit = min(64 << 20, max(2 * needed + (1 << 20), 16 << 20))
    # TODO(synk): if `needed` exceeds ~48 MiB (v7x budget), switch to a streaming
    # variant (feature in pl.ANY + manual double-buffered row DMAs).
    return pl.pallas_call(
        _gather_scale_kernel,
        out_shape=jax.ShapeDtypeStruct((k, d), feature.dtype),
        in_specs=[
            pl.BlockSpec(memory_space=pltpu.MemorySpace.SMEM),   # perm
            pl.BlockSpec(memory_space=pltpu.MemorySpace.VMEM),   # score (N,1)
            pl.BlockSpec(memory_space=pltpu.MemorySpace.VMEM),   # feature (N,D)
        ],
        out_specs=pl.BlockSpec(memory_space=pltpu.MemorySpace.VMEM),
        scratch_shapes=[pltpu.VMEM((k, 1), jnp.float32)],
        compiler_params=pltpu.CompilerParams(vmem_limit_bytes=vmem_limit),
    )(perm.astype(jnp.int32), score2d, feature)


# ---------------------------------------------------------------------------
# Glue: per-graph top-k (models.utils.topk) — variable k per graph, plain JAX
# ---------------------------------------------------------------------------
def topk_perm(score: jax.Array, batch_num_nodes, ratio: float):
    perms, next_counts = [], []
    offset = 0
    for n in batch_num_nodes:                  # static per-graph node counts
        kk = max(1, int(math.ceil(ratio * n)))
        s = jax.lax.dynamic_slice_in_dim(score, offset, n)
        idx = jnp.argsort(-s)[:kk].astype(jnp.int32) + offset
        perms.append(idx)
        next_counts.append(kk)
        offset += n
    return jnp.concatenate(perms), jnp.array(next_counts, dtype=jnp.int32)


# ---------------------------------------------------------------------------
# RandomPool.forward
# ---------------------------------------------------------------------------
def random_pool_forward(feature, batch_num_nodes, ratio=0.5, seed=0):
    n, _ = feature.shape
    assert sum(batch_num_nodes) == n
    score = random_scores(n, seed)                         # Pallas kernel (score_layer)
    perm, next_batch_num_nodes = topk_perm(score, batch_num_nodes, ratio)
    pooled = feature_transform(feature, score.reshape(n, 1), perm)  # Pallas hot path
    # TODO(synk): dgl.node_subgraph / edge-ID histogram / batch_num_edges and
    # batch-validity bookkeeping are graph-structure ops with no dense-array
    # Pallas equivalent; we return the tensor outputs (features, perm, counts).
    return pooled, perm, next_batch_num_nodes


if __name__ == "__main__":
    key = jax.random.PRNGKey(0)
    N, D = 16, 32                 # 2 graphs: 6 + 10 nodes, feature dim 32
    batch_num_nodes = (6, 10)
    ratio = 0.5
    feature = jax.random.normal(key, (N, D), dtype=jnp.float32)

    pooled, perm, next_nn = random_pool_forward(feature, batch_num_nodes,
                                                ratio=ratio, seed=0)
    pooled = jax.block_until_ready(pooled)

    # sanity check of the gather/tanh/scale hot path against plain JAX
    score = random_scores(N, 0)                 # deterministic given the seed
    ref = feature[perm] * jnp.tanh(score[perm])[:, None]
    assert pooled.shape == (int(perm.shape[0]), D)
    assert bool(jnp.all(score >= 0.0)) and bool(jnp.all(score < 1.0))
    assert jnp.allclose(pooled, ref, atol=1e-6), "kernel output mismatch"

    print("KERNEL_OK")
</pallas_src>

<mosaic_0001>
module attributes {stable_mosaic.version = 11 : i64} {
  func.func @_random_score_kernel(%arg0: memref<1xi32, #tpu.memory_space<smem>>, %arg1: memref<1x128xf32, #tpu.memory_space<vmem>>) attributes {dimension_semantics = [], scalar_prefetch = 0 : i64, scratch_operands = 0 : i64, tpu.core_type = #tpu.core_type<tc>} {
    %0 = tpu.iota {dimensions = array<i32: 0>} : vector<1x128xi32>
    %1 = tpu.iota {dimensions = array<i32: 1>} : vector<1x128xi32>
    %c128_i32 = arith.constant 128 : i32
    %2 = vector.broadcast %c128_i32 : i32 to vector<1x128xi32>
    %3 = arith.muli %0, %2 : vector<1x128xi32>
    %4 = arith.addi %3, %1 : vector<1x128xi32>
    %c0 = arith.constant 0 : index
    %5 = memref.load %arg0[%c0] : memref<1xi32, #tpu.memory_space<smem>>
    %c-1640531527_i32 = arith.constant -1640531527 : i32
    %6 = arith.muli %5, %c-1640531527_i32 : i32
    %c-2048144789_i32 = arith.constant -2048144789 : i32
    %7 = arith.addi %6, %c-2048144789_i32 : i32
    %8 = vector.broadcast %7 : i32 to vector<1x128xi32>
    %9 = arith.xori %4, %8 : vector<1x128xi32>
    %c16_i32 = arith.constant 16 : i32
    %10 = vector.broadcast %c16_i32 : i32 to vector<1x128xi32>
    %11 = arith.shrui %9, %10 : vector<1x128xi32>
    %12 = arith.xori %9, %11 : vector<1x128xi32>
    %c2146121005_i32 = arith.constant 2146121005 : i32
    %13 = vector.broadcast %c2146121005_i32 : i32 to vector<1x128xi32>
    %14 = arith.muli %12, %13 : vector<1x128xi32>
    %c15_i32 = arith.constant 15 : i32
    %15 = vector.broadcast %c15_i32 : i32 to vector<1x128xi32>
    %16 = arith.shrui %14, %15 : vector<1x128xi32>
    %17 = arith.xori %14, %16 : vector<1x128xi32>
    %c-2073254261_i32 = arith.constant -2073254261 : i32
    %18 = vector.broadcast %c-2073254261_i32 : i32 to vector<1x128xi32>
    %19 = arith.muli %17, %18 : vector<1x128xi32>
    %c16_i32_0 = arith.constant 16 : i32
    %20 = vector.broadcast %c16_i32_0 : i32 to vector<1x128xi32>
    %21 = arith.shrui %19, %20 : vector<1x128xi32>
    %22 = arith.xori %19, %21 : vector<1x128xi32>
    %c8_i32 = arith.constant 8 : i32
    %23 = vector.broadcast %c8_i32 : i32 to vector<1x128xi32>
    %24 = arith.shrui %22, %23 : vector<1x128xi32>
    %25 = arith.sitofp %24 : vector<1x128xi32> to vector<1x128xf32>
    %cst = arith.constant 5.96046448E-8 : f32
    %26 = vector.broadcast %cst : f32 to vector<1x128xf32>
    %27 = arith.mulf %25, %26 : vector<1x128xf32>
    %c0_1 = arith.constant 0 : index
    %c0_2 = arith.constant 0 : index
    %28 = vector.load %arg1[%c0_1, %c0_2] : memref<1x128xf32, #tpu.memory_space<vmem>>, vector<1x128xf32>
    tpu.vector_store %arg1[%c0_1, %c0_2], %27 {strides = array<i32>} : memref<1x128xf32, #tpu.memory_space<vmem>>, vector<1x128xf32>,
    return
  }
}

</mosaic_0001>

<bundles_post_ra>
// kernel: tpu_custom_call.1
= control target key start
LH: loop header
LB: loop body
LE: loop exit
PB: predicated region body
PF: predicated region fallthrough
CT: control target
= control target key end

     0   :  { %v10_v0 = vlaneseq  ;;  %s93_s0 = inlined_call_operand.<no memory space> [shape: s32[1], index: 0, kind: input, shape index: {}]   ;;  %s94_s1 = inlined_call_operand.hbm [shape: f32[1,128], index: 1, kind: output, shape index: {}]  }
   0x1   :  { %s17_s8 = smul.u32 2654435769, %s93_s0 }
   0x2   :  { %7 = vsyncpa [#allocation4], 0  ;;  %v11_v1 = vshrl.u32 %v10_v0, 7  ;;  %v13_v2 = vand.u32 127, %v10_v0  ;;  %s76_s10 = smov [#allocation3]   ;;  %s40_s13 = sshll.u32 %s94_s1, 4  ;;  %s41_s13 = int_to_ptr.hbm [resolvable:$true] %s40_s13 }
   0x3   :  { %s18_s9 = sadd.s32 2246822507, %s17_s8  ;;  %s38_s11 = sshll.u32 %s76_s10, 4  ;;  %s39_s11 = int_to_ptr.vmem [resolvable:$true] %s38_s11 }
   0x4   :  { %v14_v3 = vmul.u32 128, %v11_v1  ;;  %v19_v4 = vstv %s18_s9 }
   0x6   :  { %v15_v5 = vadd.s32 %v14_v3, %v13_v2 }
   0x8   :  { %v20_v6 = vxor.u32 %v19_v4, %v15_v5 }
   0xa   :  { %v21_v7 = vshrl.u32 %v20_v6, 16 }
   0xc   :  { %v22_v8 = vxor.u32 %v21_v7, %v20_v6 }
   0xe   :  { %v23_v9 = vmul.u32 2146121005, %v22_v8 }
  0x10   :  { %v24_v10 = vshrl.u32 %v23_v9, 15 }
  0x12   :  { %v25_v11 = vxor.u32 %v24_v10, %v23_v9 }
  0x14   :  { %v26_v12 = vmul.u32 2221713035, %v25_v11 }
  0x16   :  { %v27_v13 = vshrl.u32 %v26_v12, 16 }
  0x18   :  { %v28_v14 = vxor.u32 %v27_v13, %v26_v12 }
  0x1a   :  { %v29_v15 = vshrl.u32 %v28_v14, 8 }
  0x1c   :  { %v30_v16 = vcvt.s32.f32 %v29_v15 }
  0x1e   :  { %v31_v17 = vmul.f32 5.9604645e-08, %v30_v16 }
  0x20   :  { %32 = vst [vmem:[#allocation3] sm:$0x1] %v31_v17 }
  0x21   :  { %43 = dma.vmem_to_hbm [thread:$0]  %s39_s11, 16, %s41_s13, [#allocation4]  }
  0x22   :  { %74 = dma.done.wait [#allocation4], 16  }
  0x23   :  { %75 = vsyncadd [#allocation4], 4294967280 }
  0x24   :  { %48 = vsyncpa [#allocation4], 1 }

</bundles_post_ra>
